<compile_context>
chip_gen: v7x
topology: tpu7x:2x2x1
jax: 0.10.0
libtpu: 0.0.40
codegen_flags: <defaults>
</compile_context>

<pallas_src>
import jax
import jax.numpy as jnp
from jax.experimental import pallas as pl
from jax.experimental.pallas import tpu as pltpu

_LANE = 128                      # pad the final output dim to a multiple of this
_COMPUTE_DTYPE = jnp.bfloat16    # MXU operand dtype (accumulation stays f32)


# ----------------------------------------------------------------------------
# Fused kernel: x -> [GEMM + bias (+ReLU)] * L with everything resident in VMEM.
# refs = (x_ref, w_1, b_1, ..., w_L, b_L, o_ref)
# ----------------------------------------------------------------------------
def _make_fused_kernel(num_layers, relu_flags, compute_dtype):
    def kernel(*refs):
        x_ref = refs[0]
        o_ref = refs[-1]
        h = x_ref[...]                                   # bf16, straight onto the MXU
        for l in range(num_layers):                      # unrolled at trace time
            w_ref = refs[1 + 2 * l]
            b_ref = refs[2 + 2 * l]
            acc = jnp.dot(h, w_ref[...], preferred_element_type=jnp.float32)
            acc = acc + b_ref[...]                       # f32 epilogue (VPU)
            if relu_flags[l]:
                acc = jnp.maximum(acc, 0.0)
            if l < num_layers - 1:
                # Headed to the MXU next anyway: keep the intermediate in bf16
                # (halves VMEM spill bytes / vreg pressure at large row tiles).
                h = acc.astype(compute_dtype)
            else:
                h = acc                                  # final epilogue stays f32
        o_ref[...] = h.astype(o_ref.dtype)
    return kernel


def _pick_row_tile(M):
    """Big tiles (amortize ~0.35us/step); >=2 steps once M >= 1024 (v7x has 2 TCs)."""
    if M <= 1024:
        return M                                         # single step (block == full dim)
    n_steps = max(2, pl.cdiv(M, 1024))
    return pl.cdiv(pl.cdiv(M, n_steps), 8) * 8           # 512..1024, multiple of 8


def fused_mlp_chain(x2d, layers, relu_flags):
    """x2d:(M,K0) bf16; layers: [(W_l (K_l,N_l) bf16, b_l (1,N_l) f32)] -> (M,N_L) f32."""
    M, K0 = x2d.shape
    n_out = layers[-1][0].shape[1]
    tm = _pick_row_tile(M)
    grid = (pl.cdiv(M, tm),)

    resident = pl.Buffered(1)          # constant-index blocks: no double buffering
    in_specs = [pl.BlockSpec((tm, K0), lambda i: (i, 0))]
    args = [x2d]
    flops = 0
    weight_bytes = 0
    for (wl, bl) in layers:
        K, N = wl.shape
        in_specs.append(pl.BlockSpec((K, N), lambda i: (0, 0), pipeline_mode=resident))
        in_specs.append(pl.BlockSpec((1, N), lambda i: (0, 0), pipeline_mode=resident))
        args += [wl, bl]
        flops += 2 * M * K * N
        weight_bytes += K * N * wl.dtype.itemsize + N * bl.dtype.itemsize
    out_specs = pl.BlockSpec((tm, n_out), lambda i: (i, 0))

    bytes_accessed = (M * K0 * x2d.dtype.itemsize        # streamed input (bf16)
                      + M * n_out * 4                    # streamed output (f32)
                      + weight_bytes)                    # resident weights/biases
    cost = pl.CostEstimate(flops=flops, transcendentals=0,
                           bytes_accessed=bytes_accessed)

    # VMEM footprint: double-buffered x/out row tiles + single-buffered weights.
    vmem_est = (2 * tm * K0 * x2d.dtype.itemsize
                + 2 * tm * n_out * 4
                + weight_bytes)
    vmem_limit = None
    if vmem_est > 12 * 1024 * 1024:                      # past the v5e scoped default
        vmem_limit = min(2 * vmem_est, 48 * 1024 * 1024)

    kernel = _make_fused_kernel(len(layers), tuple(relu_flags), layers[0][0].dtype)
    return pl.pallas_call(
        kernel,
        out_shape=jax.ShapeDtypeStruct((M, n_out), jnp.float32),
        grid_spec=pl.GridSpec(grid=grid, in_specs=in_specs, out_specs=out_specs),
        compiler_params=pltpu.CompilerParams(
            dimension_semantics=("parallel",),
            vmem_limit_bytes=vmem_limit),
        cost_estimate=cost,
    )(*args)


# ----------------------------------------------------------------------------
# One-time parameter folding: each Conv3x3(s2,p1) stage becomes a dense matrix
# acting on NCHW-flattened activations (rows = input flat index, cols = output
# flat index, both channel-major), so NHWC<->NCHW transposes and im2col are free
# at runtime and the fc weight applies with no permutation.
# ----------------------------------------------------------------------------
def fold_params(params, image_size, input_dim, compute_dtype=_COMPUTE_DTYPE):
    layers, relu = [], []
    cin, h, w = input_dim, image_size, image_size
    for (wk, bk) in params["conv"]:                      # wk: (Cout, Cin, 3, 3) torch OIHW
        cout = wk.shape[0]
        ho, wo = (h - 1) // 2 + 1, (w - 1) // 2 + 1      # stride 2, pad 1, kernel 3
        n_in, n_out = cin * h * w, cout * ho * wo
        if n_in * n_out * 2 > 8 * 1024 * 1024:
            # TODO(synk): in-kernel 9-tap conv path for large image_size (folded
            # weights would not stay VMEM-resident and inflate MXU work on v5e).
            raise NotImplementedError(
                "folded conv weights too large for VMEM residency; "
                "use a 9-tap in-kernel conv for image_size > ~32")
        eye = jnp.eye(n_in, dtype=jnp.float32).reshape(n_in, cin, h, w)
        y = jax.lax.conv_general_dilated(
            eye, wk, window_strides=(2, 2), padding=((1, 1), (1, 1)),
            dimension_numbers=("NCHW", "OIHW", "NCHW"))
        dense = y.reshape(n_in, n_out)                   # NCHW-flatten on both sides
        bias = jnp.repeat(bk, ho * wo)                   # channel-major, matches flatten
        layers.append((dense.astype(compute_dtype),
                       bias.reshape(1, -1).astype(jnp.float32)))
        relu.append(True)
        cin, h, w = cout, ho, wo

    # SharedGroupMLP(groups=1, nr_mlps=1, hidden_dims=[]) == Linear(total_dim, out).
    # Zero-pad the output dim to a lane multiple (128) so stores are lane-dense and
    # unmasked; the wrapper slices the padding back off.
    fc_w = params["fc_w"].astype(jnp.float32)
    fc_b = params["fc_b"].astype(jnp.float32)
    out_dim = fc_w.shape[1]
    pad = (-out_dim) % _LANE
    if pad:
        fc_w = jnp.pad(fc_w, ((0, 0), (0, pad)))
        fc_b = jnp.pad(fc_b, (0, pad))
    layers.append((fc_w.astype(compute_dtype), fc_b.reshape(1, -1)))
    relu.append(False)
    return {"layers": layers, "relu": tuple(relu), "output_dim": out_dim}


# ----------------------------------------------------------------------------
# Visual2Symbolic forward (fused)
# ----------------------------------------------------------------------------
def visual2symbolic_forward(x, folded):
    """x: (B, nr_images, H, W) -> (B, nr_images, output_dim)."""
    B, nr_images, H, W = x.shape
    # torch: x.float(); view(-1, 1, h, w).  Conv / flatten reordering is folded into
    # the weights, so only a row-major reshape is needed here.  The input stream is
    # fed to the kernel in bf16 (MXU operand dtype; halves HBM read traffic on the
    # memory-bound v6e/v7x) -- in a full model this cast fuses into the producer.
    x2d = x.reshape(B * nr_images, H * W).astype(_COMPUTE_DTYPE)
    out = fused_mlp_chain(x2d, folded["layers"], folded["relu"])
    out_dim = folded["output_dim"]
    return out[:, :out_dim].reshape(B, nr_images, out_dim)


# ----------------------------------------------------------------------------
# Torch-layout parameters + pure-JAX f32 reference (for correctness check)
# ----------------------------------------------------------------------------
def init_params(key, conv_hidden_dims, input_dim, image_size, output_dim):
    params = {"conv": []}
    cin, h, w = input_dim, image_size, image_size
    for cout in conv_hidden_dims:
        key, k1, k2 = jax.random.split(key, 3)
        wk = jax.random.normal(k1, (cout, cin, 3, 3), jnp.float32) * 0.1   # OIHW
        bk = jax.random.normal(k2, (cout,), jnp.float32) * 0.01
        params["conv"].append((wk, bk))
        cin, h, w = cout, h // 2, w // 2
    total_dim = cin * h * w                              # cnn_output_dim * spatial_dim
    key, k1, k2 = jax.random.split(key, 3)
    params["fc_w"] = jax.random.normal(k1, (total_dim, output_dim), jnp.float32) * 0.05
    params["fc_b"] = jax.random.normal(k2, (output_dim,), jnp.float32) * 0.01
    return params


def reference_forward(x, params):
    B, nr, H, W = x.shape
    h = x.astype(jnp.float32).reshape(B * nr, 1, H, W)
    for wk, bk in params["conv"]:
        h = jax.lax.conv_general_dilated(
            h, wk, window_strides=(2, 2), padding=((1, 1), (1, 1)),
            dimension_numbers=("NCHW", "OIHW", "NCHW"))
        h = jnp.maximum(h + bk[None, :, None, None], 0.0)
    N, C, Ho, Wo = h.shape
    flat = h.reshape(N, C * Ho * Wo)                     # torch channel-major flatten
    out = flat @ params["fc_w"] + params["fc_b"]
    return out.reshape(B, nr, -1)


if __name__ == "__main__":
    B, NR_IMAGES, IMG = 2, 4, 16
    CONV_HIDDEN_DIMS = [8, 16]
    OUTPUT_DIM = 32

    key = jax.random.PRNGKey(0)
    key, kx = jax.random.split(key)
    x = jax.random.normal(kx, (B, NR_IMAGES, IMG, IMG), jnp.float32)

    params = init_params(key, CONV_HIDDEN_DIMS, input_dim=1,
                         image_size=IMG, output_dim=OUTPUT_DIM)
    folded = fold_params(params, image_size=IMG, input_dim=1)

    fwd = jax.jit(lambda inp: visual2symbolic_forward(inp, folded))
    y = jax.block_until_ready(fwd(x))

    assert y.shape == (B, NR_IMAGES, OUTPUT_DIM), y.shape
    assert y.dtype == jnp.float32
    assert bool(jnp.all(jnp.isfinite(y)))

    # Correctness vs. pure-JAX f32 reference (bf16 operands -> loose tolerance).
    ref = reference_forward(x, params)
    assert bool(jnp.allclose(y, ref, rtol=0.1, atol=0.05)), \
        f"max abs err {float(jnp.max(jnp.abs(y - ref)))}"

    print("KERNEL_OK")
</pallas_src>

<mosaic_0001>
module attributes {stable_mosaic.version = 11 : i64} {
  func.func @kernel(%arg0: i32, %arg1: memref<8x256xbf16, #tpu.memory_space<vmem>>, %arg2: memref<256x512xbf16, #tpu.memory_space<vmem>>, %arg3: memref<1x512xf32, #tpu.memory_space<vmem>>, %arg4: memref<512x256xbf16, #tpu.memory_space<vmem>>, %arg5: memref<1x256xf32, #tpu.memory_space<vmem>>, %arg6: memref<256x128xbf16, #tpu.memory_space<vmem>>, %arg7: memref<1x128xf32, #tpu.memory_space<vmem>>, %arg8: memref<8x128xf32, #tpu.memory_space<vmem>>) attributes {dimension_semantics = [#tpu.dimension_semantics<parallel>], iteration_bounds = array<i64: 1>, scalar_prefetch = 0 : i64, scratch_operands = 0 : i64, tpu.core_type = #tpu.core_type<tc>, window_params = [{transform_indices = @transform_0, window_bounds = array<i64: 8, 256>}, {pipeline_mode = #tpu.pipeline_mode<synchronous>, transform_indices = @transform_1, window_bounds = array<i64: 256, 512>}, {pipeline_mode = #tpu.pipeline_mode<synchronous>, transform_indices = @transform_2, window_bounds = array<i64: 1, 512>}, {pipeline_mode = #tpu.pipeline_mode<synchronous>, transform_indices = @transform_3, window_bounds = array<i64: 512, 256>}, {pipeline_mode = #tpu.pipeline_mode<synchronous>, transform_indices = @transform_4, window_bounds = array<i64: 1, 256>}, {pipeline_mode = #tpu.pipeline_mode<synchronous>, transform_indices = @transform_5, window_bounds = array<i64: 256, 128>}, {pipeline_mode = #tpu.pipeline_mode<synchronous>, transform_indices = @transform_6, window_bounds = array<i64: 1, 128>}, {transform_indices = @transform_7, window_bounds = array<i64: 8, 128>}]} {
    %c0 = arith.constant 0 : index
    %c0_0 = arith.constant 0 : index
    %0 = vector.load %arg1[%c0, %c0_0] : memref<8x256xbf16, #tpu.memory_space<vmem>>, vector<8x256xbf16>
    %c0_1 = arith.constant 0 : index
    %c0_2 = arith.constant 0 : index
    %1 = vector.load %arg2[%c0_1, %c0_2] : memref<256x512xbf16, #tpu.memory_space<vmem>>, vector<256x512xbf16>
    %cst = arith.constant dense<0.000000e+00> : vector<8x512xf32>
    %2 = tpu.matmul %0, %1, %cst {dimension_numbers = #tpu.dot_dimension_numbers<[1], [0], [0], [1], [0, 0, 1, 1], [], []>} : vector<8x256xbf16>, vector<256x512xbf16>, vector<8x512xf32> -> vector<8x512xf32>
    %c0_3 = arith.constant 0 : index
    %c0_4 = arith.constant 0 : index
    %3 = vector.load %arg3[%c0_3, %c0_4] : memref<1x512xf32, #tpu.memory_space<vmem>>, vector<1x512xf32>
    %4 = vector.broadcast %3 : vector<1x512xf32> to vector<8x512xf32>
    %5 = arith.addf %2, %4 : vector<8x512xf32>
    %cst_5 = arith.constant 0.000000e+00 : f32
    %6 = vector.broadcast %cst_5 : f32 to vector<8x512xf32>
    %7 = arith.maximumf %5, %6 : vector<8x512xf32>
    %8 = arith.truncf %7 : vector<8x512xf32> to vector<8x512xbf16>
    %c0_6 = arith.constant 0 : index
    %c0_7 = arith.constant 0 : index
    %9 = vector.load %arg4[%c0_6, %c0_7] : memref<512x256xbf16, #tpu.memory_space<vmem>>, vector<512x256xbf16>
    %cst_8 = arith.constant dense<0.000000e+00> : vector<8x256xf32>
    %10 = tpu.matmul %8, %9, %cst_8 {dimension_numbers = #tpu.dot_dimension_numbers<[1], [0], [0], [1], [0, 0, 1, 1], [], []>} : vector<8x512xbf16>, vector<512x256xbf16>, vector<8x256xf32> -> vector<8x256xf32>
    %c0_9 = arith.constant 0 : index
    %c0_10 = arith.constant 0 : index
    %11 = vector.load %arg5[%c0_9, %c0_10] : memref<1x256xf32, #tpu.memory_space<vmem>>, vector<1x256xf32>
    %12 = vector.broadcast %11 : vector<1x256xf32> to vector<8x256xf32>
    %13 = arith.addf %10, %12 : vector<8x256xf32>
    %cst_11 = arith.constant 0.000000e+00 : f32
    %14 = vector.broadcast %cst_11 : f32 to vector<8x256xf32>
    %15 = arith.maximumf %13, %14 : vector<8x256xf32>
    %16 = arith.truncf %15 : vector<8x256xf32> to vector<8x256xbf16>
    %c0_12 = arith.constant 0 : index
    %c0_13 = arith.constant 0 : index
    %17 = vector.load %arg6[%c0_12, %c0_13] : memref<256x128xbf16, #tpu.memory_space<vmem>>, vector<256x128xbf16>
    %cst_14 = arith.constant dense<0.000000e+00> : vector<8x128xf32>
    %18 = tpu.matmul %16, %17, %cst_14 {dimension_numbers = #tpu.dot_dimension_numbers<[1], [0], [0], [1], [0, 0, 1, 1], [], []>} : vector<8x256xbf16>, vector<256x128xbf16>, vector<8x128xf32> -> vector<8x128xf32>
    %c0_15 = arith.constant 0 : index
    %c0_16 = arith.constant 0 : index
    %19 = vector.load %arg7[%c0_15, %c0_16] : memref<1x128xf32, #tpu.memory_space<vmem>>, vector<1x128xf32>
    %20 = vector.broadcast %19 : vector<1x128xf32> to vector<8x128xf32>
    %21 = arith.addf %18, %20 : vector<8x128xf32>
    %c0_17 = arith.constant 0 : index
    %c0_18 = arith.constant 0 : index
    %22 = vector.load %arg8[%c0_17, %c0_18] : memref<8x128xf32, #tpu.memory_space<vmem>>, vector<8x128xf32>
    tpu.vector_store %arg8[%c0_17, %c0_18], %21 {strides = array<i32>} : memref<8x128xf32, #tpu.memory_space<vmem>>, vector<8x128xf32>,
    return
  }
  func.func @transform_0(%arg0: i32) -> (i32, i32) {
    %c0_i32 = arith.constant 0 : i32
    %c0_i32_0 = arith.constant 0 : i32
    return %arg0, %c0_i32 : i32, i32
  }
  func.func @transform_1(%arg0: i32) -> (i32, i32) {
    %c0_i32 = arith.constant 0 : i32
    %c0_i32_0 = arith.constant 0 : i32
    %c0_i32_1 = arith.constant 0 : i32
    return %c0_i32, %c0_i32_0 : i32, i32
  }
  func.func @transform_2(%arg0: i32) -> (i32, i32) {
    %c0_i32 = arith.constant 0 : i32
    %c0_i32_0 = arith.constant 0 : i32
    %c0_i32_1 = arith.constant 0 : i32
    return %c0_i32, %c0_i32_0 : i32, i32
  }
  func.func @transform_3(%arg0: i32) -> (i32, i32) {
    %c0_i32 = arith.constant 0 : i32
    %c0_i32_0 = arith.constant 0 : i32
    %c0_i32_1 = arith.constant 0 : i32
    return %c0_i32, %c0_i32_0 : i32, i32
  }
  func.func @transform_4(%arg0: i32) -> (i32, i32) {
    %c0_i32 = arith.constant 0 : i32
    %c0_i32_0 = arith.constant 0 : i32
    %c0_i32_1 = arith.constant 0 : i32
    return %c0_i32, %c0_i32_0 : i32, i32
  }
  func.func @transform_5(%arg0: i32) -> (i32, i32) {
    %c0_i32 = arith.constant 0 : i32
    %c0_i32_0 = arith.constant 0 : i32
    %c0_i32_1 = arith.constant 0 : i32
    return %c0_i32, %c0_i32_0 : i32, i32
  }
  func.func @transform_6(%arg0: i32) -> (i32, i32) {
    %c0_i32 = arith.constant 0 : i32
    %c0_i32_0 = arith.constant 0 : i32
    %c0_i32_1 = arith.constant 0 : i32
    return %c0_i32, %c0_i32_0 : i32, i32
  }
  func.func @transform_7(%arg0: i32) -> (i32, i32) {
    %c0_i32 = arith.constant 0 : i32
    %c0_i32_0 = arith.constant 0 : i32
    return %arg0, %c0_i32 : i32, i32
  }
}

</mosaic_0001>

<bundles_post_ra>
// kernel: _lambda_.1
= control target key start
LH: loop header
LB: loop body
LE: loop exit
PB: predicated region body
PF: predicated region fallthrough
CT: control target
= control target key end

     0   :  { %s2145_s0 = inlined_call_operand.vmem [shape: bf16[8,256], index: 0, kind: input, shape index: {}]   ;;  %s2146_s1 = inlined_call_operand.vmem [shape: bf16[256,512], index: 1, kind: input, shape index: {}]   ;;  %s2147_s2 = inlined_call_operand.vmem [shape: f32[1,512], index: 2, kind: input, shape index: {}]   ;;  %s2148_s3 = inlined_call_operand.vmem [shape: bf16[512,256], index: 3, kind: input, shape index: {}]   ;;  %s2149_s4 = inlined_call_operand.vmem [shape: f32[1,256], index: 4, kind: input, shape index: {}]   ;;  %s2150_s5 = inlined_call_operand.vmem [shape: bf16[256,128], index: 5, kind: input, shape index: {}]   ;;  %s2151_s6 = inlined_call_operand.vmem [shape: f32[1,128], index: 6, kind: input, shape index: {}]   ;;  %s2152_s7 = inlined_call_operand.hbm [shape: f32[8,128], index: 7, kind: output, shape index: {}]  }
   0x1   :  { %v1380_v0 = vld [vmem:[%s2146_s1 + $0x4] ss:$16 sps:$4 sm:$0xff]   ;;  %v1382_v1 = vld [vmem:[%s2146_s1] ss:$16 sps:$4 sm:$0xff]   ;;  %v1432_v45 = vld [vmem:[%s2146_s1 + $0xc] ss:$16 sps:$4 sm:$0xff]  }
   0x2   :  { %442 = vmatprep.subr.bf16.mxu1 %v1380_v0  ;;  %v1383_v2 = vld [vmem:[%s2146_s1 + $0x24] ss:$16 sps:$4 sm:$0xff]   ;;  %v1385_v3 = vld [vmem:[%s2146_s1 + $0x20] ss:$16 sps:$4 sm:$0xff]   ;;  %v1430_v46 = vld [vmem:[%s2146_s1 + $0x8] ss:$16 sps:$4 sm:$0xff]  }
   0x3   :  { %443 = vmatpush1.bf16.msra.mxu1 %v1382_v1  ;;  %v1386_v4 = vld [vmem:[%s2146_s1 + $0x44] ss:$16 sps:$4 sm:$0xff]   ;;  %v1388_v5 = vld [vmem:[%s2146_s1 + $0x40] ss:$16 sps:$4 sm:$0xff]   ;;  %v1435_v49 = vld [vmem:[%s2146_s1 + $0x2c] ss:$16 sps:$4 sm:$0xff]  }
   0x4   :  { %444 = vmatprep.subr.bf16.mxu1 %v1383_v2  ;;  %v1389_v6 = vld [vmem:[%s2146_s1 + $0x64] ss:$16 sps:$4 sm:$0xff]   ;;  %v1391_v7 = vld [vmem:[%s2146_s1 + $0x60] ss:$16 sps:$4 sm:$0xff]   ;;  %v1433_v52 = vld [vmem:[%s2146_s1 + $0x28] ss:$16 sps:$4 sm:$0xff]  }
   0x5   :  { %v1392_v8 = vld [vmem:[%s2146_s1 + $0x84] ss:$16 sps:$4 sm:$0xff]   ;;  %v1394_v9 = vld [vmem:[%s2146_s1 + $0x80] ss:$16 sps:$4 sm:$0xff]   ;;  %v1438_v54 = vld [vmem:[%s2146_s1 + $0x4c] ss:$16 sps:$4 sm:$0xff]  }
   0x6   :  { %v1395_v10 = vld [vmem:[%s2146_s1 + $0xa4] ss:$16 sps:$4 sm:$0xff]   ;;  %v1397_v11 = vld [vmem:[%s2146_s1 + $0xa0] ss:$16 sps:$4 sm:$0xff]   ;;  %v1436_v56 = vld [vmem:[%s2146_s1 + $0x48] ss:$16 sps:$4 sm:$0xff]  }
   0x7   :  { %445 = vmatpush1.bf16.msra.mxu1 %v1385_v3  ;;  %v1398_v12 = vld [vmem:[%s2146_s1 + $0xc4] ss:$16 sps:$4 sm:$0xff]   ;;  %v1400_v15 = vld [vmem:[%s2146_s1 + $0xc0] ss:$16 sps:$4 sm:$0xff]   ;;  %v1441_v58 = vld [vmem:[%s2146_s1 + $0x6c] ss:$16 sps:$4 sm:$0xff]  }
   0x8   :  { %446 = vmatprep.subr.bf16.mxu1 %v1386_v4  ;;  %v1697_v13 = vld [vmem:[%s2145_s0] sm:$0xff]  ;;  %v1481_v29 = vld [vmem:[%s2148_s3 + $0x14] ss:$8 sps:$4 sm:$0xff]   ;;  %v1483_v31 = vld [vmem:[%s2148_s3 + $0x10] ss:$8 sps:$4 sm:$0xff]  }
   0x9   :  { %v1701_v14 = vcombine.high %v1697_v13, %v1697_v13  ;;  %v1401_v16 = vld [vmem:[%s2146_s1 + $0xe4] ss:$16 sps:$4 sm:$0xff]   ;;  %v1403_v17 = vld [vmem:[%s2146_s1 + $0xe0] ss:$16 sps:$4 sm:$0xff]   ;;  %v1805_v48 = vcombine.low %v1697_v13, %v1697_v13  ;;  %v1439_v60 = vld [vmem:[%s2146_s1 + $0x68] ss:$16 sps:$4 sm:$0xff]  }
   0xa   :  { %v1404_v18 = vld [vmem:[%s2146_s1 + $0x104] ss:$16 sps:$4 sm:$0xff]   ;;  %v1406_v19 = vld [vmem:[%s2146_s1 + $0x100] ss:$16 sps:$4 sm:$0xff]   ;;  %v1444_v62 = vld [vmem:[%s2146_s1 + $0x8c] ss:$16 sps:$4 sm:$0xff]  }
   0xb   :  { %447 = vmatpush1.bf16.msra.mxu1 %v1388_v5  ;;  %474 = vmatprep.mubr.bf16.mxu1 %v1701_v14  ;;  %v1407_v20 = vld [vmem:[%s2146_s1 + $0x124] ss:$16 sps:$4 sm:$0xff]   ;;  %v1409_v21 = vld [vmem:[%s2146_s1 + $0x120] ss:$16 sps:$4 sm:$0xff]   ;;  %v1442_v0 = vld [vmem:[%s2146_s1 + $0x88] ss:$16 sps:$4 sm:$0xff]  }
   0xc   :  { %448 = vmatprep.subr.bf16.mxu1 %v1389_v6  ;;  %v1410_v22 = vld [vmem:[%s2146_s1 + $0x144] ss:$16 sps:$4 sm:$0xff]   ;;  %v1412_v23 = vld [vmem:[%s2146_s1 + $0x140] ss:$16 sps:$4 sm:$0xff]   ;;  %v1447_v2 = vld [vmem:[%s2146_s1 + $0xac] ss:$16 sps:$4 sm:$0xff]  }
   0xd   :  { %v1413_v24 = vld [vmem:[%s2146_s1 + $0x164] ss:$16 sps:$4 sm:$0xff]   ;;  %v1415_v25 = vld [vmem:[%s2146_s1 + $0x160] ss:$16 sps:$4 sm:$0xff]   ;;  %v1445_v4 = vld [vmem:[%s2146_s1 + $0xa8] ss:$16 sps:$4 sm:$0xff]  }
   0xe   :  { %v1416_v26 = vld [vmem:[%s2146_s1 + $0x184] ss:$16 sps:$4 sm:$0xff]   ;;  %v1480_v28 = vld [vmem:[%s2148_s3] ss:$8 sps:$4 sm:$0xff]   ;;  %v1489_v39 = vld [vmem:[%s2148_s3 + $0x30] ss:$8 sps:$4 sm:$0xff]  }
   0xf   :  { %449 = vmatpush1.bf16.msra.mxu1 %v1391_v7  ;;  %v1478_v27 = vld [vmem:[%s2148_s3 + $0x4] ss:$8 sps:$4 sm:$0xff]   ;;  %v1418_v30 = vld [vmem:[%s2146_s1 + $0x180] ss:$16 sps:$4 sm:$0xff]   ;;  %v1487_v36 = vld [vmem:[%s2148_s3 + $0x34] ss:$8 sps:$4 sm:$0xff]  }
  0x10   :  { %450 = vmatprep.subr.bf16.mxu1 %v1392_v8  ;;  %928 = vmatprep.subr.bf16.mxu0 %v1478_v27  ;;  %v1484_v32 = vld [vmem:[%s2148_s3 + $0x24] ss:$8 sps:$4 sm:$0xff]   ;;  %v1421_v34 = vld [vmem:[%s2146_s1 + $0x1a0] ss:$16 sps:$4 sm:$0xff]   ;;  %v1493_v44 = vld [vmem:[%s2148_s3 + $0x54] ss:$8 sps:$4 sm:$0xff]  }
  0x11   :  { %929 = vmatpush1.bf16.msra.mxu0 %v1480_v28  ;;  %v1419_v33 = vld [vmem:[%s2146_s1 + $0x1a4] ss:$16 sps:$4 sm:$0xff]   ;;  %v1486_v35 = vld [vmem:[%s2148_s3 + $0x20] ss:$8 sps:$4 sm:$0xff]   ;;  %v1495_v47 = vld [vmem:[%s2148_s3 + $0x50] ss:$8 sps:$4 sm:$0xff]  }
  0x12   :  { %930 = vmatprep.subr.bf16.mxu0 %v1481_v29  ;;  %v1422_v37 = vld [vmem:[%s2146_s1 + $0x1c4] ss:$16 sps:$4 sm:$0xff]   ;;  %v1424_v38 = vld [vmem:[%s2146_s1 + $0x1c0] ss:$16 sps:$4 sm:$0xff]   ;;  %v1450_v6 = vld [vmem:[%s2146_s1 + $0xcc] ss:$16 sps:$4 sm:$0xff]  }
  0x13   :  { %451 = vmatpush1.bf16.msra.mxu1 %v1394_v9  ;;  %v1490_v40 = vld [vmem:[%s2148_s3 + $0x44] ss:$8 sps:$4 sm:$0xff]   ;;  %v1427_v42 = vld [vmem:[%s2146_s1 + $0x1e0] ss:$16 sps:$4 sm:$0xff]   ;;  %v1499_v53 = vld [vmem:[%s2148_s3 + $0x74] ss:$8 sps:$4 sm:$0xff]  }
  0x14   :  { %452 = vmatprep.subr.bf16.mxu1 %v1395_v10  ;;  %v1425_v41 = vld [vmem:[%s2146_s1 + $0x1e4] ss:$16 sps:$4 sm:$0xff]   ;;  %v1492_v43 = vld [vmem:[%s2148_s3 + $0x40] ss:$8 sps:$4 sm:$0xff]   ;;  %v1501_v55 = vld [vmem:[%s2148_s3 + $0x70] ss:$8 sps:$4 sm:$0xff]  }
  0x15   :  { %931 = vmatpush1.bf16.msra.mxu0 %v1483_v31  ;;  %v1496_v50 = vld [vmem:[%s2148_s3 + $0x64] ss:$8 sps:$4 sm:$0xff]   ;;  %v1498_v51 = vld [vmem:[%s2148_s3 + $0x60] ss:$8 sps:$4 sm:$0xff]   ;;  %v1505_v61 = vld [vmem:[%s2148_s3 + $0x94] ss:$8 sps:$4 sm:$0xff]  }
  0x16   :  { %932 = vmatprep.subr.bf16.mxu0 %v1484_v32  ;;  %v1502_v57 = vld [vmem:[%s2148_s3 + $0x84] ss:$8 sps:$4 sm:$0xff]   ;;  %v1504_v59 = vld [vmem:[%s2148_s3 + $0x80] ss:$8 sps:$4 sm:$0xff]   ;;  %v1507_v63 = vld [vmem:[%s2148_s3 + $0x90] ss:$8 sps:$4 sm:$0xff]  }
  0x17   :  { %453 = vmatpush1.bf16.msra.mxu1 %v1397_v11  ;;  %v1508_v1 = vld [vmem:[%s2148_s3 + $0xa4] ss:$8 sps:$4 sm:$0xff]   ;;  %v1510_v3 = vld [vmem:[%s2148_s3 + $0xa0] ss:$8 sps:$4 sm:$0xff]   ;;  %v1511_v5 = vld [vmem:[%s2148_s3 + $0xb4] ss:$8 sps:$4 sm:$0xff]  }
  0x18   :  { %454 = vmatprep.subr.bf16.mxu1 %v1398_v12 }
  0x19   :  { %933 = vmatpush1.bf16.msra.mxu0 %v1486_v35 }
  0x1a   :  { %934 = vmatprep.subr.bf16.mxu0 %v1487_v36 }
  0x1b   :  { %455 = vmatpush1.bf16.msra.mxu1 %v1400_v15 }
  0x1c   :  { %456 = vmatprep.subr.bf16.mxu1 %v1401_v16 }
  0x1d   :  { %935 = vmatpush1.bf16.msra.mxu0 %v1489_v39 }
  0x1e   :  { %936 = vmatprep.subr.bf16.mxu0 %v1490_v40 }
  0x1f   :  { %457 = vmatpush1.bf16.msra.mxu1 %v1403_v17 }
  0x20   :  { %458 = vmatprep.subr.bf16.mxu1 %v1404_v18 }
  0x21   :  { %937 = vmatpush1.bf16.msra.mxu0 %v1492_v43 }
  0x22   :  { %938 = vmatprep.subr.bf16.mxu0 %v1493_v44 }
  0x23   :  { %459 = vmatpush1.bf16.msra.mxu1 %v1406_v19 }
  0x24   :  { %460 = vmatprep.subr.bf16.mxu1 %v1407_v20 }
  0x25   :  { %939 = vmatpush1.bf16.msra.mxu0 %v1495_v47 }
  0x26   :  { %940 = vmatprep.subr.bf16.mxu0 %v1496_v50 }
  0x27   :  { %461 = vmatpush1.bf16.msra.mxu1 %v1409_v21 }
  0x28   :  { %462 = vmatprep.subr.bf16.mxu1 %v1410_v22 }
  0x29   :  { %941 = vmatpush1.bf16.msra.mxu0 %v1498_v51 }
  0x2a   :  { %942 = vmatprep.subr.bf16.mxu0 %v1499_v53 }
  0x2b   :  { %463 = vmatpush1.bf16.msra.mxu1 %v1412_v23 }
  0x2c   :  { %464 = vmatprep.subr.bf16.mxu1 %v1413_v24 }
  0x2d   :  { %943 = vmatpush1.bf16.msra.mxu0 %v1501_v55 }
  0x2e   :  { %944 = vmatprep.subr.bf16.mxu0 %v1502_v57 }
  0x2f   :  { %465 = vmatpush1.bf16.msra.mxu1 %v1415_v25 }
  0x30   :  { %466 = vmatprep.subr.bf16.mxu1 %v1416_v26 }
  0x31   :  { %945 = vmatpush1.bf16.msra.mxu0 %v1504_v59 }
  0x32   :  { %946 = vmatprep.subr.bf16.mxu0 %v1505_v61 }
  0x33   :  { %467 = vmatpush1.bf16.msra.mxu1 %v1418_v30 }
  0x34   :  { %468 = vmatprep.subr.bf16.mxu1 %v1419_v33 }
  0x35   :  { %947 = vmatpush1.bf16.msra.mxu0 %v1507_v63 }
  0x36   :  { %948 = vmatprep.subr.bf16.mxu0 %v1508_v1 }
  0x37   :  { %469 = vmatpush1.bf16.msra.mxu1 %v1421_v34 }
  0x38   :  { %470 = vmatprep.subr.bf16.mxu1 %v1422_v37 }
  0x3b   :  { %471 = vmatpush1.bf16.msra.mxu1 %v1424_v38 }
  0x3c   :  { %472 = vmatprep.subr.bf16.mxu1 %v1425_v41 }
  0x3f   :  { %473 = vmatpush1.bf16.msra.mxu1 %v1427_v42 }
  0x40   :  { %483 = vmatprep.subr.bf16.mxu1 %v1432_v45 }
  0x42   :  { %475 = vmatmul.mubr.bf16.vlgmr.msra.gmra.mrb[0].mxu1 %v1805_v48 }
  0x43   :  { %484 = vmatpush1.bf16.msra.mxu1 %v1430_v46  ;;  %515 = vmatprep.mubr.bf16.mxu1 %v1701_v14 }
  0x44   :  { %485 = vmatprep.subr.bf16.mxu1 %v1435_v49 }
  0x47   :  { %486 = vmatpush1.bf16.msra.mxu1 %v1433_v52 }
  0x48   :  { %487 = vmatprep.subr.bf16.mxu1 %v1438_v54 }
  0x4b   :  { %488 = vmatpush1.bf16.msra.mxu1 %v1436_v56 }
  0x4c   :  { %489 = vmatprep.subr.bf16.mxu1 %v1441_v58 }
  0x4f   :  { %490 = vmatpush1.bf16.msra.mxu1 %v1439_v60 }
  0x50   :  { %491 = vmatprep.subr.bf16.mxu1 %v1444_v62 }
  0x53   :  { %492 = vmatpush1.bf16.msra.mxu1 %v1442_v0 }
  0x54   :  { %493 = vmatprep.subr.bf16.mxu1 %v1447_v2 }
  0x55   :  { %12 = vsyncpa [#allocation3], 0  ;;  %949 = vmatpush1.bf16.msra.mxu0 %v1510_v3  ;;  %v1513_v7 = vld [vmem:[%s2148_s3 + $0xb0] ss:$8 sps:$4 sm:$0xff]   ;;  %v1514_v9 = vld [vmem:[%s2148_s3 + $0xc4] ss:$8 sps:$4 sm:$0xff]  }
  0x56   :  { %v1448_v8 = vld [vmem:[%s2146_s1 + $0xc8] ss:$16 sps:$4 sm:$0xff]   ;;  %950 = vmatprep.subr.bf16.mxu0 %v1511_v5  ;;  %v1453_v10 = vld [vmem:[%s2146_s1 + $0xec] ss:$16 sps:$4 sm:$0xff]   ;;  %v1574_v36 = vld [vmem:[%s2150_s5 + $0x40] sm:$0xff]   ;;  %s1614_s23 = smov [#allocation2]  }
  0x57   :  { %494 = vmatpush1.bf16.msra.mxu1 %v1445_v4  ;;  %v1516_v11 = vld [vmem:[%s2148_s3 + $0xc0] ss:$8 sps:$4 sm:$0xff]   ;;  %v1517_v13 = vld [vmem:[%s2148_s3 + $0xd4] ss:$8 sps:$4 sm:$0xff]   ;;  %v1519_v15 = vld [vmem:[%s2148_s3 + $0xd0] ss:$8 sps:$4 sm:$0xff]  }
  0x58   :  { %495 = vmatprep.subr.bf16.mxu1 %v1450_v6  ;;  %v1451_v12 = vld [vmem:[%s2146_s1 + $0xe8] ss:$16 sps:$4 sm:$0xff]   ;;  %v1456_v14 = vld [vmem:[%s2146_s1 + $0x10c] ss:$16 sps:$4 sm:$0xff]   ;;  %v1575_v37 = vld [vmem:[%s2150_s5] sm:$0xff]   ;;  %s1196_s24 = sshll.u32 %s1614_s23, 4  ;;  %s1197_s24 = int_to_ptr.vmem [resolvable:$true] %s1196_s24 }
  0x59   :  { %951 = vmatpush1.bf16.msra.mxu0 %v1513_v7  ;;  %v1454_v16 = vld [vmem:[%s2146_s1 + $0x108] ss:$16 sps:$4 sm:$0xff]   ;;  %v1459_v17 = vld [vmem:[%s2146_s1 + $0x12c] ss:$16 sps:$4 sm:$0xff]   ;;  %v1578_v40 = vld [vmem:[%s2150_s5 + $0x50] sm:$0xff]   ;;  %s1590_s25 = scalar_lea.vmem %s1197_s24, 128  ;;  %p1595_p1 = scmp.lt.s32.totalorder %s1197_s24, %s1197_s24 }
  0x5a   :  { %952 = vmatprep.subr.bf16.mxu0 %v1514_v9  ;;  %v1457_v18 = vld [vmem:[%s2146_s1 + $0x128] ss:$16 sps:$4 sm:$0xff]   ;;  %v1462_v19 = vld [vmem:[%s2146_s1 + $0x14c] ss:$16 sps:$4 sm:$0xff]   ;;  %v1579_v41 = vld [vmem:[%s2150_s5 + $0x10] sm:$0xff]   ;;  %p1591_p0 = scmp.ne.s32.totalorder %s1197_s24, %s1590_s25  ;;  %p1596_p2 = scmp.lt.s32.totalorder %s1590_s25, %s1590_s25 }
  0x5b   :  { %496 = vmatpush1.bf16.msra.mxu1 %v1448_v8  ;;  %v1460_v20 = vld [vmem:[%s2146_s1 + $0x148] ss:$16 sps:$4 sm:$0xff]   ;;  %v1465_v21 = vld [vmem:[%s2146_s1 + $0x16c] ss:$16 sps:$4 sm:$0xff]   ;;  %v1582_v44 = vld [vmem:[%s2150_s5 + $0x60] sm:$0xff]  }
  0x5c   :  { %497 = vmatprep.subr.bf16.mxu1 %v1453_v10  ;;  %v1463_v22 = vld [vmem:[%s2146_s1 + $0x168] ss:$16 sps:$4 sm:$0xff]   ;;  %v1468_v23 = vld [vmem:[%s2146_s1 + $0x18c] ss:$16 sps:$4 sm:$0xff]   ;;  %v1583_v45 = vld [vmem:[%s2150_s5 + $0x20] sm:$0xff]   ;;  %p1597_p3 = por %p1596_p2, %p1595_p1 }
  0x5d   :  { %953 = vmatpush1.bf16.msra.mxu0 %v1516_v11  ;;  %v1466_v24 = vld [vmem:[%s2146_s1 + $0x188] ss:$16 sps:$4 sm:$0xff]   ;;  %v1471_v25 = vld [vmem:[%s2146_s1 + $0x1ac] ss:$16 sps:$4 sm:$0xff]   ;;  %v2005_v51 = vld [vmem:[%s2147_s2] sm:$0xf] }
  0x5e   :  { %954 = vmatprep.subr.bf16.mxu0 %v1517_v13  ;;  %v1469_v26 = vld [vmem:[%s2146_s1 + $0x1a8] ss:$16 sps:$4 sm:$0xff]   ;;  %v1474_v27 = vld [vmem:[%s2146_s1 + $0x1cc] ss:$16 sps:$4 sm:$0xff]   ;;  %p1598_p4 = pnand %p1597_p3, %p1591_p0 }
  0x5f   :  { %498 = vmatpush1.bf16.msra.mxu1 %v1451_v12  ;;  %v1472_v28 = vld [vmem:[%s2146_s1 + $0x1c8] ss:$16 sps:$4 sm:$0xff]   ;;  %v1477_v29 = vld [vmem:[%s2146_s1 + $0x1ec] ss:$16 sps:$4 sm:$0xff]  }
  0x60   :  { %499 = vmatprep.subr.bf16.mxu1 %v1456_v14  ;;  %v1475_v30 = vld [vmem:[%s2146_s1 + $0x1e8] ss:$16 sps:$4 sm:$0xff]   ;;  %v1520_v31 = vld [vmem:[%s2148_s3 + $0xe4] ss:$8 sps:$4 sm:$0xff]   ;;  %v1523_v33 = vld [vmem:[%s2148_s3 + $0xf4] ss:$8 sps:$4 sm:$0xff]  }
  0x61   :  { %955 = vmatpush1.bf16.msra.mxu0 %v1519_v15  ;;  %v1522_v32 = vld [vmem:[%s2148_s3 + $0xe0] ss:$8 sps:$4 sm:$0xff]   ;;  %v1525_v34 = vld [vmem:[%s2148_s3 + $0xf0] ss:$8 sps:$4 sm:$0xff]   ;;  %v1528_v35 = vld [vmem:[%s2148_s3 + $0x104] ss:$8 sps:$4 sm:$0xff]  }
  0x62   :  { %956 = vmatprep.subr.bf16.mxu0 %v1520_v31  ;;  %v1576_v38 = vld [vmem:[%s2150_s5 + $0x48] sm:$0xff]   ;;  %v1580_v42 = vld [vmem:[%s2150_s5 + $0x58] sm:$0xff]  }
  0x63   :  { %500 = vmatpush1.bf16.msra.mxu1 %v1454_v16  ;;  %v1577_v39 = vld [vmem:[%s2150_s5 + $0x8] sm:$0xff]   ;;  %v1581_v43 = vld [vmem:[%s2150_s5 + $0x18] sm:$0xff]  }
  0x64   :  { %501 = vmatprep.subr.bf16.mxu1 %v1459_v17  ;;  %v1584_v46 = vld [vmem:[%s2150_s5 + $0x68] sm:$0xff]   ;;  %v1531_v2 = vld [vmem:[%s2148_s3 + $0x114] ss:$8 sps:$4 sm:$0xff]   ;;  %v1529_v3 = vld [vmem:[%s2148_s3 + $0x110] ss:$8 sps:$4 sm:$0xff]  }
  0x65   :  { %957 = vmatpush1.bf16.msra.mxu0 %v1522_v32  ;;  %v1585_v47 = vld [vmem:[%s2150_s5 + $0x28] sm:$0xff]   ;;  %v1537_v6 = vld [vmem:[%s2148_s3 + $0x134] ss:$8 sps:$4 sm:$0xff]   ;;  %v1535_v7 = vld [vmem:[%s2148_s3 + $0x130] ss:$8 sps:$4 sm:$0xff]  }
  0x66   :  { %958 = vmatprep.subr.bf16.mxu0 %v1523_v33  ;;  %v1526_v1 = vld [vmem:[%s2148_s3 + $0x100] ss:$8 sps:$4 sm:$0xff]   ;;  %v1534_v4 = vld [vmem:[%s2148_s3 + $0x124] ss:$8 sps:$4 sm:$0xff]   ;;  %v1543_v10 = vld [vmem:[%s2148_s3 + $0x154] ss:$8 sps:$4 sm:$0xff]  }
  0x67   :  { %502 = vmatpush1.bf16.msra.mxu1 %v1457_v18  ;;  %v1532_v5 = vld [vmem:[%s2148_s3 + $0x120] ss:$8 sps:$4 sm:$0xff]   ;;  %v1540_v8 = vld [vmem:[%s2148_s3 + $0x144] ss:$8 sps:$4 sm:$0xff]   ;;  %v1541_v11 = vld [vmem:[%s2148_s3 + $0x150] ss:$8 sps:$4 sm:$0xff]  }
  0x68   :  { %503 = vmatprep.subr.bf16.mxu1 %v1462_v19  ;;  %v1538_v9 = vld [vmem:[%s2148_s3 + $0x140] ss:$8 sps:$4 sm:$0xff]   ;;  %v1546_v12 = vld [vmem:[%s2148_s3 + $0x164] ss:$8 sps:$4 sm:$0xff]   ;;  %v1549_v14 = vld [vmem:[%s2148_s3 + $0x174] ss:$8 sps:$4 sm:$0xff]  }
  0x69   :  { %959 = vmatpush1.bf16.msra.mxu0 %v1525_v34  ;;  %v1544_v13 = vld [vmem:[%s2148_s3 + $0x160] ss:$8 sps:$4 sm:$0xff]   ;;  %v1547_v15 = vld [vmem:[%s2148_s3 + $0x170] ss:$8 sps:$4 sm:$0xff]   ;;  %v1552_v16 = vld [vmem:[%s2148_s3 + $0x184] ss:$8 sps:$4 sm:$0xff]  }
  0x6a   :  { %969 = vmatprep.subr.bf16.mxu0 %v1528_v35  ;;  %v1550_v17 = vld [vmem:[%s2148_s3 + $0x180] ss:$8 sps:$4 sm:$0xff]   ;;  %v1555_v18 = vld [vmem:[%s2148_s3 + $0x194] ss:$8 sps:$4 sm:$0xff]   ;;  %v1553_v19 = vld [vmem:[%s2148_s3 + $0x190] ss:$8 sps:$4 sm:$0xff]  }
  0x6b   :  { %504 = vmatpush1.bf16.msra.mxu1 %v1460_v20  ;;  %v1558_v20 = vld [vmem:[%s2148_s3 + $0x1a4] ss:$8 sps:$4 sm:$0xff]   ;;  %v1568_v33 = vld [vmem:[%s2148_s3 + $0x1e0] ss:$8 sps:$4 sm:$0xff]   ;;  %v1573_v34 = vld [vmem:[%s2148_s3 + $0x1f4] ss:$8 sps:$4 sm:$0xff]  }
  0x6c   :  { %505 = vmatprep.subr.bf16.mxu1 %v1465_v21  ;;  %v1556_v21 = vld [vmem:[%s2148_s3 + $0x1a0] ss:$8 sps:$4 sm:$0xff]  }
  0x6f   :  { %506 = vmatpush1.bf16.msra.mxu1 %v1463_v22  ;;  %v1561_v22 = vld [vmem:[%s2148_s3 + $0x1b4] ss:$8 sps:$4 sm:$0xff]  }
  0x70   :  { %507 = vmatprep.subr.bf16.mxu1 %v1468_v23  ;;  %v1559_v23 = vld [vmem:[%s2148_s3 + $0x1b0] ss:$8 sps:$4 sm:$0xff]  }
  0x73   :  { %508 = vmatpush1.bf16.msra.mxu1 %v1466_v24  ;;  %v1564_v24 = vld [vmem:[%s2148_s3 + $0x1c4] ss:$8 sps:$4 sm:$0xff]  }
  0x74   :  { %509 = vmatprep.subr.bf16.mxu1 %v1471_v25  ;;  %v1562_v25 = vld [vmem:[%s2148_s3 + $0x1c0] ss:$8 sps:$4 sm:$0xff]  }
  0x77   :  { %510 = vmatpush1.bf16.msra.mxu1 %v1469_v26  ;;  %v1567_v26 = vld [vmem:[%s2148_s3 + $0x1d4] ss:$8 sps:$4 sm:$0xff]  }
  0x78   :  { %511 = vmatprep.subr.bf16.mxu1 %v1474_v27 }
  0x7b   :  { %512 = vmatpush1.bf16.msra.mxu1 %v1472_v28  ;;  %v1565_v28 = vld [vmem:[%s2148_s3 + $0x1d0] ss:$8 sps:$4 sm:$0xff]  }
  0x7c   :  { %513 = vmatprep.subr.bf16.mxu1 %v1477_v29 }
  0x7f   :  { %514 = vmatpush1.bf16.msra.mxu1 %v1475_v30  ;;  %v1570_v30 = vld [vmem:[%s2148_s3 + $0x1e4] ss:$8 sps:$4 sm:$0xff]  }
  0x80   :  { %1351 = vmatprep.subr.bf16.mxu1 %v1574_v36 }
  0x82   :  { %516 = vmatmul.mubr.bf16.vlgmr.msra.gmra.mrb[4].mxu1 %v1805_v48  ;;  %v95_v48 = vlaneseq }
  0x83   :  { %1352 = vmatpush3.bf16.msra.mxu1 %v1575_v37 }
  0x84   :  { %1353 = vmatprep.subr.bf16.mxu1 %v1576_v38  ;;  %v1999_v49 = vshrl.u32 %v95_v48, 7  ;;  %v1588_v48 = vld [vmem:[%s2150_s5 + $0x78] sm:$0xff]  }
  0x86   :  { %v97_v50 = vsub.s32 0, %v1999_v49  ;;  %v101_v52 = vsub.s32 1, %v1999_v49  ;;  %v105_v27 = vsub.s32 2, %v1999_v49  ;;  %v109_v29 = vsub.s32 3, %v1999_v49 }
  0x87   :  { %1354 = vmatpush3.bf16.msra.mxu1 %v1577_v39 }
  0x88   :  { %1355 = vmatprep.subr.bf16.mxu1 %v1578_v40  ;;  %v98_v53 = vrot.slane %v2005_v51, %v97_v50  ;;  %v102_v54 = vrot.slane %v2005_v51, %v101_v52  ;;  %v106_v31 = vrot.slane %v2005_v51, %v105_v27  ;;  %v110_v32 = vrot.slane %v2005_v51, %v109_v29  ;;  %v1571_v40 = vld [vmem:[%s2148_s3 + $0x1f0] ss:$8 sps:$4 sm:$0xff]  }
  0x89   :  { %v1589_v51 = vld [vmem:[%s2150_s5 + $0x38] sm:$0xff]  }
  0x8b   :  { %1356 = vmatpush3.bf16.msra.mxu1 %v1579_v41 }
  0x8c   :  { %1357 = vmatprep.subr.bf16.mxu1 %v1580_v42 }
  0x8f   :  { %1358 = vmatpush3.bf16.msra.mxu1 %v1581_v43 }
  0x90   :  { %1359 = vmatprep.subr.bf16.mxu1 %v1582_v44 }
  0x93   :  { %1360 = vmatpush3.bf16.msra.mxu1 %v1583_v45 }
  0x94   :  { %1361 = vmatprep.subr.bf16.mxu1 %v1584_v46  ;;  %v1586_v46 = vld [vmem:[%s2150_s5 + $0x70] sm:$0xff]  }
  0x97   :  { %1362 = vmatpush3.bf16.msra.mxu1 %v1585_v47  ;;  %v1587_v47 = vld [vmem:[%s2150_s5 + $0x30] sm:$0xff]  }
  0x98   :  { %1363 = vmatprep.subr.bf16.mxu1 %v1586_v46 }
  0x9b   :  { %1364 = vmatpush3.bf16.msra.mxu1 %v1587_v47 }
  0x9c   :  { %1365 = vmatprep.subr.bf16.mxu1 %v1588_v48 }
  0x9f   :  { %1366 = vmatpush3.bf16.msra.mxu1 %v1589_v51 }
 0x115   :  { %v476_v55 = vpop.f32.mrb[0].mxu1 }
 0x116   :  { %v477_v56 = vadd.f32 %v476_v55, %v98_v53  ;;  %v478_v57 = vpop.f32.mrb[1].mxu1  ;;  %v596_v53 = vld [vmem:[%s2149_s4] sm:$0x3] }
 0x117   :  { %v479_v58 = vadd.f32 %v478_v57, %v102_v54  ;;  %v480_v59 = vpop.f32.mrb[2].mxu1  ;;  %v601_v54 = vrot.slane %v596_v53, %v97_v50  ;;  %v605_v55 = vrot.slane %v596_v53, %v101_v52  ;;  %v1334_v50 = vld [vmem:[%s2151_s6] ss:$0 sm:$0xff] }
 0x118   :  { %v524_v60 = vmax.f32 %v477_v56, 0.0  ;;  %v481_v61 = vpop.f32.mrb[3].mxu1 }
 0x119   :  { %v525_v62 = vmax.f32 %v479_v58, 0.0 }
 0x11a   :  { %v528_v63 = vpack.c.bf16 %v524_v60, %v524_v60 }
 0x11b   :  { %v529_v0 = vpack.c.bf16 %v525_v62, %v525_v62 }
 0x11d   :  { %960 = vmatprep.mubr.bf16.mxu0 %v529_v0 }
 0x11e   :  { %961 = vmatmul.mubr.bf16.vlgmr.msra.gmra.mrb[0].mxu0 %v528_v63 }
 0x11f   :  { %970 = vmatpush1.bf16.msra.mxu0 %v1526_v1 }
 0x120   :  { %971 = vmatprep.subr.bf16.mxu0 %v1531_v2 }
 0x123   :  { %972 = vmatpush1.bf16.msra.mxu0 %v1529_v3 }
 0x124   :  { %973 = vmatprep.subr.bf16.mxu0 %v1534_v4 }
 0x127   :  { %974 = vmatpush1.bf16.msra.mxu0 %v1532_v5 }
 0x128   :  { %975 = vmatprep.subr.bf16.mxu0 %v1537_v6 }
 0x12b   :  { %976 = vmatpush1.bf16.msra.mxu0 %v1535_v7 }
 0x12c   :  { %977 = vmatprep.subr.bf16.mxu0 %v1540_v8 }
 0x12f   :  { %978 = vmatpush1.bf16.msra.mxu0 %v1538_v9 }
 0x130   :  { %979 = vmatprep.subr.bf16.mxu0 %v1543_v10 }
 0x133   :  { %980 = vmatpush1.bf16.msra.mxu0 %v1541_v11 }
 0x134   :  { %981 = vmatprep.subr.bf16.mxu0 %v1546_v12 }
 0x137   :  { %982 = vmatpush1.bf16.msra.mxu0 %v1544_v13 }
 0x138   :  { %983 = vmatprep.subr.bf16.mxu0 %v1549_v14 }
 0x13b   :  { %984 = vmatpush1.bf16.msra.mxu0 %v1547_v15 }
 0x13c   :  { %985 = vmatprep.subr.bf16.mxu0 %v1552_v16 }
 0x13f   :  { %986 = vmatpush1.bf16.msra.mxu0 %v1550_v17 }
 0x140   :  { %987 = vmatprep.subr.bf16.mxu0 %v1555_v18 }
 0x143   :  { %988 = vmatpush1.bf16.msra.mxu0 %v1553_v19 }
 0x144   :  { %989 = vmatprep.subr.bf16.mxu0 %v1558_v20 }
 0x147   :  { %990 = vmatpush1.bf16.msra.mxu0 %v1556_v21 }
 0x148   :  { %991 = vmatprep.subr.bf16.mxu0 %v1561_v22 }
 0x14b   :  { %992 = vmatpush1.bf16.msra.mxu0 %v1559_v23 }
 0x14c   :  { %993 = vmatprep.subr.bf16.mxu0 %v1564_v24 }
 0x14f   :  { %994 = vmatpush1.bf16.msra.mxu0 %v1562_v25 }
 0x150   :  { %995 = vmatprep.subr.bf16.mxu0 %v1567_v26 }
 0x153   :  { %996 = vmatpush1.bf16.msra.mxu0 %v1565_v28 }
 0x154   :  { %997 = vmatprep.subr.bf16.mxu0 %v1570_v30 }
 0x155   :  { %v517_v35 = vpop.f32.mrb[4].mxu1 }
 0x156   :  { %v518_v36 = vadd.f32 %v517_v35, %v106_v31  ;;  %v519_v37 = vpop.f32.mrb[5].mxu1 }
 0x157   :  { %v520_v38 = vadd.f32 %v519_v37, %v110_v32  ;;  %v521_v39 = vpop.f32.mrb[6].mxu1  ;;  %998 = vmatpush1.bf16.msra.mxu0 %v1568_v33 }
 0x158   :  { %v526_v41 = vmax.f32 %v518_v36, 0.0  ;;  %v522_v42 = vpop.f32.mrb[7].mxu1  ;;  %999 = vmatprep.subr.bf16.mxu0 %v1573_v34 }
 0x159   :  { %v527_v43 = vmax.f32 %v520_v38, 0.0 }
 0x15a   :  { %v530_v45 = vpack.c.bf16 %v526_v41, %v526_v41 }
 0x15b   :  { %v531_v44 = vpack.c.bf16 %v527_v43, %v527_v43  ;;  %1000 = vmatpush1.bf16.msra.mxu0 %v1571_v40 }
 0x15d   :  { %1001 = vmatprep.mubr.bf16.mxu0 %v531_v44 }
 0x15e   :  { %1002 = vmatmul.mubr.bf16.vlgmr.msra.gmra.mrb[0].mxu0 %v530_v45 }
 0x231   :  { %v1003_v56 = vpop.f32.mrb[0].mxu0 }
 0x232   :  { %v1373_v57 = vadd.f32 %v1003_v56, %v601_v54  ;;  %v1005_v58 = vpop.f32.mrb[1].mxu0 }
 0x233   :  { %v1374_v59 = vadd.f32 %v1005_v58, %v605_v55  ;;  %v1007_v60 = vpop.f32.mrb[2].mxu0 }
 0x234   :  { %v1010_v61 = vmax.f32 %v1373_v57, 0.0  ;;  %v1008_v62 = vpop.f32.mrb[3].mxu0 }
 0x235   :  { %v1011_v63 = vmax.f32 %v1374_v59, 0.0 }
 0x236   :  { %v1012_v1 = vpack.c.bf16 %v1010_v61, %v1010_v61 }
 0x237   :  { %v1013_v0 = vpack.c.bf16 %v1011_v63, %v1011_v63 }
 0x239   :  { %1181 = vmatprep.mubr.bf16.mxu1 %v1013_v0 }
 0x23a   :  { %1182 = vmatmul.mubr.bf16.vlgmr.msra.gmra.mrb[8].mxu1 %v1012_v1 }
 0x30d   :  { %v1367_v2 = vpop.f32.mrb[8].mxu1 }
 0x30e   :  { %v1368_v3 = vpop.f32.mrb[9].mxu1 }
 0x30f   :  { %v1369_v49 = vadd.f32 %v1368_v3, %v1367_v2  ;;  %v1370_v52 = vpop.f32.mrb[10].mxu1 }
 0x310   :  { %v1371_v4 = vpop.f32.mrb[11].mxu1 }
 0x311   :  { %v1184_v5 = vadd.f32 %v1369_v49, %v1334_v50 }
 0x313   :  { %1189 = vst [vmem:[#allocation2] sm:$0xff] %v1184_v5 }
 0x314   :  { %1601 = shalt.err (!%p1598_p4)
}
 0x315   :  { %s1602_s27 = scalar_lea.hbm %s2152_s7, 128 }
 0x316   :  { %p1603_p5 = scmp.ne.s32.totalorder %s2152_s7, %s1602_s27  ;;  %p1606_p6 = scmp.lt.u32.totalorder %s1602_s27, %s2152_s7 }
 0x318   :  { %p1608_p7 = pnand %p1606_p6, %p1603_p5 }
 0x31a   :  { %1611 = shalt.err (!%p1608_p7)
}
 0x31b   :  { %1199 = dma.vmem_to_hbm [thread:$0]  %s1197_s24, 128, %s2152_s7, [#allocation3]  }
 0x31c   :  { %1612 = dma.done.wait [#allocation3], 128  }
 0x31d   :  { %1613 = vsyncadd [#allocation3], 4294967168 }
 0x31e   :  { %1203 = vsyncpa [#allocation3], 1 }

</bundles_post_ra>
